<compile_context>
chip_gen: v5e
topology: v5e:2x2
jax: 0.10.0
libtpu: 0.0.40
codegen_flags: <defaults>
</compile_context>

<pallas_src>
import numpy as np
import jax
import jax.numpy as jnp
from jax.experimental import pallas as pl
from jax.experimental.pallas import tpu as pltpu

MANUAL_INIT = (0.1, 0.83, 0.23, 0.42, 0.8, 0.34, 0.53, 0.23, 0.43, 0.35, 0.42,
               0.3, 0.23, 0.45, 0.62, 0.45, 0.53, 0.28, 0.63, 0.24, 0.22, 0.01,
               0.42, 0.62, 0.45, 0.19, 0.08, 0.23, 0.84, 0.11, 0.42, 0.3, 0.23,
               0.01, 0.53, 0.32, 0.53, 0.23, 0.63, 0.24, 0.22, 0.19, 0.08, 0.63,
               0.45, 0.07, 0.84, 0.45, 0.07, 0.28, 0.22, 0.01, 0.08, 0.23, 0.84,
               0.42, 0.62, 0.45, 0.32, 0.11, 0.42, 0.3, 0.42, 0.84, 0.42, 0.19,
               0.11, 0.08, 0.42, 0.24, 0.22, 0.19, 0.23, 0.23, 0.42, 0.01, 0.42,
               0.42, 0.11, 0.28, 0.28, 0.9, 0.34, 0.82, 0.07, 0.32, 0.34, 0.82,
               0.32, 0.32, 0.07, 0.32, 0.34, 0.82, 0.32, 0.32, 0.42, 0.01, 0.84,
               0.45)


def _round_up(n, m):
    return ((n + m - 1) // m) * m


def _conv_glu_kernel(xa_ref, xg_ref, w_ref, b_ref, o_ref):
    """One output row tile: both GLU halves as single MXU dots + fused epilogue.

    xa_ref / xg_ref : (tm, K*C_in)  im2col'd rows of the 'a' / 'g' halves.
    w_ref           : (K*C_in, C_out) resident flattened weights.
    b_ref           : (1, C_out) resident bias (f32).
    o_ref           : (tm, C_out) GLU output tile.
    """
    w = w_ref[...]
    b = b_ref[...]
    a = jnp.dot(xa_ref[...], w, preferred_element_type=jnp.float32) + b
    g = jnp.dot(xg_ref[...], w, preferred_element_type=jnp.float32) + b
    o_ref[...] = (a * jax.nn.sigmoid(g)).astype(o_ref.dtype)


def conv_glu_tbc(x, weight, bias, padding, *, tile_rows_target=2048,
                 compute_dtype=jnp.float32, out_dtype=jnp.float32):
    """x: (T, B, C_in); weight: (K, C_in, C_out); bias: (C_out,)
    -> (T_out//2, B, C_out) where T_out = T + 2*padding - K + 1."""
    T, B, C_in = x.shape
    K, _, C_out = weight.shape
    T_out = T + 2 * padding - K + 1
    if T_out <= 0 or T_out % 2:
        raise ValueError("GLU along dim 0 requires a positive, even conv output length")
    T_half = T_out // 2
    H = T_half * B                     # rows per GLU half (flattened t*B + b)
    KC = K * C_in

    # --- Row tile selection: multiple of the sublane count, independent of
    # --- H's factorization (tail rows are zero-padded and stripped later).
    sub = 32 // jnp.dtype(compute_dtype).itemsize   # 8 for f32, 16 for bf16
    tm = max(sub, (min(int(tile_rows_target), H) // sub) * sub)
    if -(-H // tm) < 2:                 # single-step grid -> try to split in 2
        tm_half = max(sub, _round_up((H + 1) // 2, sub))
        if tm_half < tm:                # genuinely yields >= 2 steps (megacore)
            tm = tm_half
    H_pad = _round_up(H, tm)
    nb = H_pad // tm

    # --- Wrapper-side im2col along the channel axis: row r gets the K taps
    # --- x_flat[r + k*B, :] concatenated, so the conv is one matmul.
    x_pad = jnp.pad(x, ((padding, padding), (0, 0), (0, 0)))
    x_flat = x_pad.reshape((T + 2 * padding) * B, C_in)
    cols = jnp.concatenate(
        [x_flat[k * B:k * B + 2 * H] for k in range(K)], axis=-1)   # (2H, KC)
    xa = cols[:H]                       # GLU 'a' half rows
    xg = cols[H:]                       # GLU 'g' half rows
    if H_pad != H:
        xa = jnp.pad(xa, ((0, H_pad - H), (0, 0)))
        xg = jnp.pad(xg, ((0, H_pad - H), (0, 0)))
    xa = xa.astype(compute_dtype)
    xg = xg.astype(compute_dtype)

    w_flat = weight.reshape(KC, C_out).astype(compute_dtype)
    b_row = bias.reshape(1, C_out).astype(jnp.float32)

    out_pad = pl.pallas_call(
        _conv_glu_kernel,
        out_shape=jax.ShapeDtypeStruct((H_pad, C_out), out_dtype),
        grid=(nb,),
        in_specs=[
            # 'a' / 'g' half row tiles (last dim == full array dim -> legal).
            pl.BlockSpec((tm, KC), lambda i: (i, 0)),
            pl.BlockSpec((tm, KC), lambda i: (i, 0)),
            # Weight / bias: tiny, resident in VMEM across all grid steps.
            pl.BlockSpec((KC, C_out), lambda i: (0, 0)),
            pl.BlockSpec((1, C_out), lambda i: (0, 0)),
        ],
        # True-width output (no lane padding): last dim == full array dim.
        out_specs=pl.BlockSpec((tm, C_out), lambda i: (i, 0)),
        compiler_params=pltpu.CompilerParams(
            dimension_semantics=("parallel",),   # megacore sharding on v7x
            vmem_limit_bytes=32 * 1024 * 1024,   # usage is ~MBs; safe on all gens
        ),
    )(xa, xg, w_flat, b_row)

    out = out_pad[:H] if H_pad != H else out_pad
    return out.reshape(T_half, B, C_out)


def conv_glu_reference(x, weight, bias, padding):
    """Pure-JAX reference (conv_tbc + glu(dim=0))."""
    T, B, C_in = x.shape
    K, _, C_out = weight.shape
    T_out = T + 2 * padding - K + 1
    x_pad = jnp.pad(x, ((padding, padding), (0, 0), (0, 0)))
    y = bias[None, None, :] + sum(
        jnp.einsum("tbc,cd->tbd", x_pad[k:k + T_out], weight[k])
        for k in range(K))
    half = T_out // 2
    return y[:half] * jax.nn.sigmoid(y[half:])


if __name__ == "__main__":
    # Module config: kernel_size=3, in_channels=4, out_channels=4
    # -> 3*4*4 = 48 weight values + 4 bias values from MANUAL_INIT.
    K, C_in, C_out, padding = 3, 4, 4, 1

    vals = np.asarray(MANUAL_INIT, dtype=np.float32)
    weight = jnp.asarray(vals[:K * C_in * C_out].reshape(K, C_in, C_out))
    bias = jnp.asarray(vals[K * C_in * C_out:K * C_in * C_out + C_out])

    k1, k2 = jax.random.split(jax.random.PRNGKey(0))

    # Case 1: module-scale small shape (T=8, B=2), f32, single grid step.
    x1 = jax.random.normal(k1, (8, 2, C_in), dtype=jnp.float32)
    out1 = jax.block_until_ready(conv_glu_tbc(x1, weight, bias, padding))
    ref1 = conv_glu_reference(x1, weight, bias, padding)
    np.testing.assert_allclose(np.asarray(out1), np.asarray(ref1),
                               rtol=1e-5, atol=1e-5)

    # Case 2: larger shape, non-divisor tile -> cdiv grid + padded/stripped tail.
    x2 = jax.random.normal(k2, (64, 8, C_in), dtype=jnp.float32)
    out2 = jax.block_until_ready(
        conv_glu_tbc(x2, weight, bias, padding, tile_rows_target=96))
    ref2 = conv_glu_reference(x2, weight, bias, padding)
    np.testing.assert_allclose(np.asarray(out2), np.asarray(ref2),
                               rtol=1e-5, atol=1e-5)

    # Case 3: default (large) tile target -> auto-split into a 2-step grid.
    out3 = jax.block_until_ready(conv_glu_tbc(x2, weight, bias, padding))
    np.testing.assert_allclose(np.asarray(out3), np.asarray(ref2),
                               rtol=1e-5, atol=1e-5)

    # Case 4: bf16 MXU inputs (valid on v5e/v6e/v7x), f32 accumulate/elementwise.
    out4 = jax.block_until_ready(
        conv_glu_tbc(x2, weight, bias, padding, compute_dtype=jnp.bfloat16))
    np.testing.assert_allclose(np.asarray(out4), np.asarray(ref2),
                               rtol=1e-1, atol=1e-1)

    print("KERNEL_OK")
</pallas_src>

<mosaic_0001>
module attributes {stable_mosaic.version = 11 : i64} {
  func.func @_conv_glu_kernel(%arg0: i32, %arg1: memref<8x12xf32, #tpu.memory_space<vmem>>, %arg2: memref<8x12xf32, #tpu.memory_space<vmem>>, %arg3: memref<12x4xf32, #tpu.memory_space<vmem>>, %arg4: memref<1x4xf32, #tpu.memory_space<vmem>>, %arg5: memref<8x4xf32, #tpu.memory_space<vmem>>) attributes {dimension_semantics = [#tpu.dimension_semantics<parallel>], iteration_bounds = array<i64: 1>, scalar_prefetch = 0 : i64, scratch_operands = 0 : i64, tpu.core_type = #tpu.core_type<tc>, window_params = [{transform_indices = @transform_0, window_bounds = array<i64: 8, 12>}, {transform_indices = @transform_1, window_bounds = array<i64: 8, 12>}, {pipeline_mode = #tpu.pipeline_mode<synchronous>, transform_indices = @transform_2, window_bounds = array<i64: 12, 4>}, {pipeline_mode = #tpu.pipeline_mode<synchronous>, transform_indices = @transform_3, window_bounds = array<i64: 1, 4>}, {transform_indices = @transform_4, window_bounds = array<i64: 8, 4>}]} {
    %c0 = arith.constant 0 : index
    %c0_0 = arith.constant 0 : index
    %0 = vector.load %arg3[%c0, %c0_0] : memref<12x4xf32, #tpu.memory_space<vmem>>, vector<12x4xf32>
    %c0_1 = arith.constant 0 : index
    %c0_2 = arith.constant 0 : index
    %1 = vector.load %arg4[%c0_1, %c0_2] : memref<1x4xf32, #tpu.memory_space<vmem>>, vector<1x4xf32>
    %c0_3 = arith.constant 0 : index
    %c0_4 = arith.constant 0 : index
    %2 = vector.load %arg1[%c0_3, %c0_4] : memref<8x12xf32, #tpu.memory_space<vmem>>, vector<8x12xf32>
    %cst = arith.constant dense<0.000000e+00> : vector<8x4xf32>
    %3 = tpu.matmul %2, %0, %cst {dimension_numbers = #tpu.dot_dimension_numbers<[1], [0], [0], [1], [0, 0, 1, 1], [], []>} : vector<8x12xf32>, vector<12x4xf32>, vector<8x4xf32> -> vector<8x4xf32>
    %4 = vector.broadcast %1 : vector<1x4xf32> to vector<8x4xf32>
    %5 = arith.addf %3, %4 : vector<8x4xf32>
    %c0_5 = arith.constant 0 : index
    %c0_6 = arith.constant 0 : index
    %6 = vector.load %arg2[%c0_5, %c0_6] : memref<8x12xf32, #tpu.memory_space<vmem>>, vector<8x12xf32>
    %cst_7 = arith.constant dense<0.000000e+00> : vector<8x4xf32>
    %7 = tpu.matmul %6, %0, %cst_7 {dimension_numbers = #tpu.dot_dimension_numbers<[1], [0], [0], [1], [0, 0, 1, 1], [], []>} : vector<8x12xf32>, vector<12x4xf32>, vector<8x4xf32> -> vector<8x4xf32>
    %8 = vector.broadcast %1 : vector<1x4xf32> to vector<8x4xf32>
    %9 = arith.addf %7, %8 : vector<8x4xf32>
    %10 = arith.negf %9 : vector<8x4xf32>
    %11 = math.exp %10 : vector<8x4xf32>
    %cst_8 = arith.constant 1.000000e+00 : f32
    %12 = vector.broadcast %cst_8 : f32 to vector<8x4xf32>
    %13 = arith.addf %12, %11 : vector<8x4xf32>
    %14 = arith.divf %12, %13 : vector<8x4xf32>
    %15 = arith.mulf %5, %14 : vector<8x4xf32>
    %c0_9 = arith.constant 0 : index
    %c0_10 = arith.constant 0 : index
    %16 = vector.load %arg5[%c0_9, %c0_10] : memref<8x4xf32, #tpu.memory_space<vmem>>, vector<8x4xf32>
    tpu.vector_store %arg5[%c0_9, %c0_10], %15 {strides = array<i32>} : memref<8x4xf32, #tpu.memory_space<vmem>>, vector<8x4xf32>,
    return
  }
  func.func @transform_0(%arg0: i32) -> (i32, i32) {
    %c0_i32 = arith.constant 0 : i32
    %c0_i32_0 = arith.constant 0 : i32
    return %arg0, %c0_i32 : i32, i32
  }
  func.func @transform_1(%arg0: i32) -> (i32, i32) {
    %c0_i32 = arith.constant 0 : i32
    %c0_i32_0 = arith.constant 0 : i32
    return %arg0, %c0_i32 : i32, i32
  }
  func.func @transform_2(%arg0: i32) -> (i32, i32) {
    %c0_i32 = arith.constant 0 : i32
    %c0_i32_0 = arith.constant 0 : i32
    %c0_i32_1 = arith.constant 0 : i32
    return %c0_i32, %c0_i32_0 : i32, i32
  }
  func.func @transform_3(%arg0: i32) -> (i32, i32) {
    %c0_i32 = arith.constant 0 : i32
    %c0_i32_0 = arith.constant 0 : i32
    %c0_i32_1 = arith.constant 0 : i32
    return %c0_i32, %c0_i32_0 : i32, i32
  }
  func.func @transform_4(%arg0: i32) -> (i32, i32) {
    %c0_i32 = arith.constant 0 : i32
    %c0_i32_0 = arith.constant 0 : i32
    return %arg0, %c0_i32 : i32, i32
  }
}

</mosaic_0001>

<bundles_post_ra>
// kernel: tpu_custom_call.1
= control target key start
LH: loop header
LB: loop body
LE: loop exit
PB: predicated region body
PF: predicated region fallthrough
CT: control target
= control target key end

     0   :  { %vm28_vm0 = vcmask 1043456   ;;  %vm24_vm1 = vcmask 97280   ;;  %vm96_vm6 = vcmask 31744   ;;  %s155_s2 = inlined_call_operand.vmem [shape: f32[12,4], index: 2, kind: input, shape index: {}]   ;;  %s156_s1 = inlined_call_operand.vmem [shape: f32[8,12], index: 1, kind: input, shape index: {}]   ;;  %s157_s0 = inlined_call_operand.vmem [shape: f32[8,12], index: 0, kind: input, shape index: {}]   ;;  %s158_s3 = inlined_call_operand.vmem [shape: f32[1,4], index: 3, kind: input, shape index: {}]   ;;  %s159_s4 = inlined_call_operand.vmem [shape: f32[8,4], index: 4, kind: output, shape index: {}]  }
   0x1   :  { %v18_v0 = vld [vmem:[%s155_s2 + $0x8] sm:$0xf]  ;;  %v17_v1 = vld [vmem:[%s155_s2] sm:$0xff] }
   0x2   :  { %104 = vmatpush.msk.msra.mxu1 %vm28_vm0, %v18_v0  ;;  %v52_v2 = vld [vmem:[%s156_s1] sm:$0xff]  ;;  %102 = vmatpush.msk.msra.mxu0 %vm28_vm0, %v18_v0 }
   0x3   :  { %v20_v3 = vld [vmem:[%s157_s0] sm:$0xff] }
   0x4   :  { %71 = vmatpush.msra.mxu1 %v17_v1  ;;  %47 = vmatpush.msra.mxu0 %v17_v1  ;;  %v107_v4 = vld [vmem:[%s158_s3] ss:$0 sm:$0xff] }
   0x5   :  { %105 = vmatmul.msk.f32.vlgmr.msra.gmra.mxu1 %vm24_vm1, %v52_v2  ;;  %103 = vmatmul.msk.f32.vlgmr.msra.gmra.mxu0 %vm24_vm1, %v20_v3 }
  0x82   :  { %v73_v5 = vpop.f32.mrf.mxu1  ;;  %v49_v13 = vpop.f32.mrf.mxu0 }
  0x83   :  { %v74_v6 = vadd.f32 %v107_v4, %v73_v5  ;;  %v50_v17 = vadd.f32 %v107_v4, %v49_v13 }
  0x85   :  { %v106_v7 = vmul.f32 -1.442695, %v74_v6 }
  0x87   :  { %108 = vpow2.f32 %v106_v7 }
  0x8d   :  { %v109_v8 = vpop.eup %108 }
  0x8e   :  { %v79_v9 = vadd.f32 1.0, %v109_v8 }
  0x90   :  { %110 = vrcp.f32 %v79_v9  ;;  %v91_v14 = vand.u32 2147483648, %v79_v9  ;;  %v89_v16 = vand.u32 2147483647, %v79_v9  ;;  %vm85_vm3 = vweird.f32 %v79_v9 }
  0x92   :  { %v92_v19 = vor.u32 1.1754944e-38, %v91_v14  ;;  %vm90_vm5 = vcmp.eq.f32.partialorder %v89_v16, 8.507059e+37 }
  0x96   :  { %v111_v10 = vpop.eup %110 }
  0x97   :  { %v81_v11 = vmul.f32 %v111_v10, %v79_v9  ;;  %vm86_vm2 = vweird.f32 %v111_v10 }
  0x98   :  { %vm87_vm4 = vmor %vm85_vm3, %vm86_vm2 }
  0x99   :  { %v82_v12 = vsub.f32 1.0, %v81_v11 }
  0x9b   :  { %v83_v15 = vmul.f32 %v111_v10, %v82_v12 }
  0x9d   :  { %v84_v18 = vadd.f32 %v111_v10, %v83_v15 }
  0x9f   :  { %v88_v20 = vsel %vm87_vm4, %v111_v10, %v84_v18 }
  0xa0   :  { %v93_v21 = vsel %vm90_vm5, %v92_v19, %v88_v20 }
  0xa1   :  { %v95_v22 = vmul.f32 %v93_v21, %v50_v17 }
  0xa3   :  { %97 = vst.msk [vmem:[%s159_s4] sm:$0xff] %vm96_vm6, %v95_v22 }

</bundles_post_ra>
